<compile_context>
chip_gen: v5e
topology: v5e:2x2
jax: 0.10.0
libtpu: 0.0.40
codegen_flags: <defaults>
</compile_context>

<pallas_src>
import functools

import jax
import jax.numpy as jnp
from jax import lax
from jax.experimental import pallas as pl
from jax.experimental.pallas import tpu as pltpu


def _round_up(x, m):
    return (x + m - 1) // m * m


def _vmem_limit_bytes():
    # v5e/v6e: 128 MiB physical VMEM per TensorCore, v7x: 64 MiB.  Leave ~25%
    # headroom for compiler scratch; cap at 64 MiB (we never need more).
    try:
        cap = pltpu.get_tpu_info().vmem_capacity_bytes
    except Exception:
        cap = 64 << 20  # assume the smallest (v7x) if the query is unavailable
    return int(min(64 << 20, (cap * 3) // 4))


def _projection_matrix(skew_val, atoms, v_min, v_max, delta):
    """(atoms, atoms) matrix P such that skewed_anchor = anchor @ P for this skew."""
    supports = jnp.linspace(v_min, v_max, atoms, dtype=jnp.float32)
    Tz = jnp.clip(jnp.float32(skew_val) + supports, v_min, v_max)
    b = (Tz - v_min) / delta
    l = jnp.floor(b).astype(jnp.int32)
    u = jnp.ceil(b).astype(jnp.int32)
    l = jnp.where((u > 0) & (l == u), l - 1, l)            # l[(u>0)&(l==u)] -= 1
    u = jnp.where((l < atoms - 1) & (l == u), u + 1, u)    # uses updated l (PyTorch order)
    wl = u.astype(jnp.float32) - b
    wu = b - l.astype(jnp.float32)
    rows = jnp.arange(atoms)
    P = jnp.zeros((atoms, atoms), jnp.float32)
    P = P.at[rows, l].add(wl)
    P = P.at[rows, u].add(wu)
    return P


def _categorical_loss_kernel(*refs, batch, tile_b, has_dir, has_aux,
                             needs_mask, mxu_dtype):
    if has_dir:
        anchor_ref, feature_ref, aux_ref, p_plus_ref, p_minus_ref, out_ref = refs
    elif has_aux:
        anchor_ref, feature_ref, aux_ref, p_plus_ref, out_ref = refs
        p_minus_ref = None
    else:
        anchor_ref, feature_ref, p_plus_ref, out_ref = refs
        aux_ref = p_minus_ref = None

    anchor = anchor_ref[...].astype(jnp.float32)    # (TB, A)
    feature = feature_ref[...].astype(jnp.float32)  # (TB, A)

    valid = None
    if needs_mask:
        # Last tile reads past the end of the (un-padded) inputs; the OOB rows
        # contain garbage -> force them to contribute exactly zero.
        row0 = pl.program_id(0) * tile_b
        rows = row0 + lax.broadcasted_iota(jnp.int32, (tile_b, 1), 0)
        valid = rows < batch                         # (TB, 1) bool
        anchor = jnp.where(valid, anchor, 0.0)
        feature = jnp.where(valid, feature, 1.0)     # log(1) = 0

    logf = jnp.log(feature + 1e-16)                  # EUP slot, f32

    if has_dir:
        aux = aux_ref[...]                           # (TB, 2): [w*(1-sel), w*sel]
        w_plus = aux[:, 0:1]
        w_minus = aux[:, 1:2]
        if needs_mask:
            w_plus = jnp.where(valid, w_plus, 0.0)
            w_minus = jnp.where(valid, w_minus, 0.0)
        skewed = (jnp.dot((anchor * w_plus).astype(mxu_dtype), p_plus_ref[...],
                          preferred_element_type=jnp.float32)
                  + jnp.dot((anchor * w_minus).astype(mxu_dtype), p_minus_ref[...],
                            preferred_element_type=jnp.float32))
    else:
        lhs = anchor
        if has_aux:                                  # weight-only path, aux is (TB, 1)
            w = aux_ref[...]
            if needs_mask:
                w = jnp.where(valid, w, 0.0)
            lhs = anchor * w
        skewed = jnp.dot(lhs.astype(mxu_dtype), p_plus_ref[...],
                         preferred_element_type=jnp.float32)

    # Sublane-only reduce; the cheap cross-lane reduce + negate + 1/B happen once
    # in the wrapper over the tiny (num_tiles, 1, atoms) partials array.
    partial = jnp.sum(skewed * logf, axis=0, keepdims=True)   # (1, A)
    out_ref[...] = partial[None]                               # (1, 1, A)


def categorical_loss(anchor, feature, skewness=0.0, direction=None, weight=None,
                     atoms=51, v_min=-10.0, v_max=10.0,
                     mxu_dtype=None, max_tile_b=4096):
    """Pallas implementation of CategoricalLoss.forward (returns a scalar)."""
    B = anchor.shape[0]
    delta = (v_max - v_min) / (atoms - 1)

    if mxu_dtype is None:
        # Feed the MXU bf16 only when the inputs are already bf16 so f32 callers'
        # numerics are unchanged (bf16 mainly helps v5e's smaller MXU).
        mxu_dtype = jnp.bfloat16 if anchor.dtype == jnp.bfloat16 else jnp.float32

    has_dir = direction is not None
    has_w = weight is not None
    has_aux = has_dir or has_w

    # Tiny (atoms x atoms) projection matrices -- built once, outside the kernel.
    p_plus = _projection_matrix(skewness, atoms, v_min, v_max, delta).astype(mxu_dtype)
    p_minus = None
    aux = None
    if has_dir:
        sel = (jnp.reshape(direction, (B,)).astype(jnp.int32) == 1).astype(jnp.float32)
        w = (jnp.reshape(weight, (B,)).astype(jnp.float32)
             if has_w else jnp.ones((B,), jnp.float32))
        aux = jnp.stack([w * (1.0 - sel), w * sel], axis=1)      # (B, 2)
        p_minus = _projection_matrix(-skewness, atoms, v_min, v_max,
                                     delta).astype(mxu_dtype)
    elif has_w:
        aux = jnp.reshape(weight, (B, 1)).astype(jnp.float32)     # (B, 1)

    # Batch tile.  VMEM per step at TB=4096 (f32 inputs):
    #   anchor+feature  2 * 4096*51*4 B  ~ 1.7 MB  (x2 double-buffered ~ 3.3 MB)
    #   aux (TB,2) lane-pads to (TB,128) ~ 2 MB    (x2 ~ 4 MB, only if dir/weight)
    #   f32 temporaries (~6 x TB*atoms*4) ~ 5 MB
    # => ~12-14 MB, comfortably inside the ~48 MB budget even on v7x (64 MiB VMEM).
    TB = min(_round_up(B, 8), max(8, _round_up(max_tile_b, 8)))
    num_tiles = (B + TB - 1) // TB
    needs_mask = (B % TB) != 0

    args = [anchor, feature]
    in_specs = [
        pl.BlockSpec((TB, atoms), lambda i: (i, 0)),            # anchor tile
        pl.BlockSpec((TB, atoms), lambda i: (i, 0)),            # feature tile
    ]
    if aux is not None:
        args.append(aux)
        in_specs.append(pl.BlockSpec((TB, aux.shape[1]), lambda i: (i, 0)))
    args.append(p_plus)
    in_specs.append(pl.BlockSpec((atoms, atoms), lambda i: (0, 0)))   # resident
    if p_minus is not None:
        args.append(p_minus)
        in_specs.append(pl.BlockSpec((atoms, atoms), lambda i: (0, 0)))

    kernel = functools.partial(
        _categorical_loss_kernel,
        batch=B, tile_b=TB, has_dir=has_dir, has_aux=has_aux,
        needs_mask=needs_mask, mxu_dtype=mxu_dtype)

    partials = pl.pallas_call(
        kernel,
        out_shape=jax.ShapeDtypeStruct((num_tiles, 1, atoms), jnp.float32),
        grid_spec=pltpu.PrefetchScalarGridSpec(
            num_scalar_prefetch=0,
            grid=(num_tiles,),
            in_specs=in_specs,
            out_specs=pl.BlockSpec((1, 1, atoms), lambda i: (i, 0, 0)),
        ),
        compiler_params=pltpu.CompilerParams(
            dimension_semantics=("parallel",),          # independent per-tile partials
            vmem_limit_bytes=_vmem_limit_bytes()),
    )(*args)

    # Final reduce / negate / mean over the tiny partials array.
    return -jnp.sum(partials) / B


def _reference_loss(anchor, feature, skewness, direction, weight,
                    atoms=51, v_min=-10.0, v_max=10.0):
    """Pure-JAX replica of the PyTorch forward (index_add_ via .at[].add)."""
    delta = (v_max - v_min) / (atoms - 1)
    B = anchor.shape[0]
    anchor = anchor.astype(jnp.float32)
    feature = feature.astype(jnp.float32)
    supports = jnp.linspace(v_min, v_max, atoms, dtype=jnp.float32)
    if direction is not None:
        skew = jnp.where(direction[:, None] == 1, -skewness, skewness) * jnp.ones((B, atoms))
    else:
        skew = jnp.full((B, atoms), skewness)
    Tz = jnp.clip(skew + supports[None, :], v_min, v_max)
    b = (Tz - v_min) / delta
    l = jnp.floor(b).astype(jnp.int32)
    u = jnp.ceil(b).astype(jnp.int32)
    l = jnp.where((u > 0) & (l == u), l - 1, l)
    u = jnp.where((l < atoms - 1) & (l == u), u + 1, u)
    offset = (jnp.arange(B, dtype=jnp.int32) * atoms)[:, None]
    flat = jnp.zeros((B * atoms,), jnp.float32)
    flat = flat.at[(l + offset).reshape(-1)].add((anchor * (u - b)).reshape(-1))
    flat = flat.at[(u + offset).reshape(-1)].add((anchor * (b - l)).reshape(-1))
    skewed_anchor = flat.reshape(B, atoms)
    per = jnp.sum(skewed_anchor * jnp.log(feature + 1e-16), axis=-1)
    if weight is not None:
        return -jnp.mean(per * weight)
    return -jnp.mean(per)


if __name__ == "__main__":
    key = jax.random.PRNGKey(0)
    ks = jax.random.split(key, 8)

    atoms = 51
    skewness = 0.5

    # 1) direction + weight, B=2 (single tile, masked ragged tail since TB=8).
    B = 2
    anchor = jax.nn.softmax(jax.random.normal(ks[0], (B, atoms)), axis=-1).astype(jnp.float32)
    feature = jax.nn.softmax(jax.random.normal(ks[1], (B, atoms)), axis=-1).astype(jnp.float32)
    direction = jnp.array([1, 0], dtype=jnp.int32)
    weight = jax.random.uniform(ks[2], (B,), minval=0.5, maxval=1.5).astype(jnp.float32)
    loss = categorical_loss(anchor, feature, skewness=skewness,
                            direction=direction, weight=weight)
    jax.block_until_ready(loss)
    ref = _reference_loss(anchor, feature, skewness, direction, weight)
    assert abs(float(loss) - float(ref)) < 1e-4, (float(loss), float(ref))

    # 2) default path (no direction / no weight): single matmul, no aux input.
    loss2 = categorical_loss(anchor, feature)
    jax.block_until_ready(loss2)
    ref2 = _reference_loss(anchor, feature, 0.0, None, None)
    assert abs(float(loss2) - float(ref2)) < 1e-4, (float(loss2), float(ref2))

    # 3) multi-tile "parallel" grid with a masked ragged tail (B=20, TB=8 -> 3 tiles).
    B = 20
    anchor3 = jax.nn.softmax(jax.random.normal(ks[3], (B, atoms)), axis=-1).astype(jnp.float32)
    feature3 = jax.nn.softmax(jax.random.normal(ks[4], (B, atoms)), axis=-1).astype(jnp.float32)
    direction3 = (jax.random.uniform(ks[5], (B,)) > 0.5).astype(jnp.int32)
    weight3 = jax.random.uniform(ks[6], (B,), minval=0.5, maxval=1.5).astype(jnp.float32)
    loss3 = categorical_loss(anchor3, feature3, skewness=skewness,
                             direction=direction3, weight=weight3, max_tile_b=8)
    jax.block_until_ready(loss3)
    ref3 = _reference_loss(anchor3, feature3, skewness, direction3, weight3)
    assert abs(float(loss3) - float(ref3)) < 1e-4, (float(loss3), float(ref3))

    # 4) weight-only fast path (single P matrix, (B, 1) aux).
    loss4 = categorical_loss(anchor3, feature3, skewness=skewness, weight=weight3,
                             max_tile_b=16)
    jax.block_until_ready(loss4)
    ref4 = _reference_loss(anchor3, feature3, skewness, None, weight3)
    assert abs(float(loss4) - float(ref4)) < 1e-4, (float(loss4), float(ref4))

    # 5) bf16 inputs stay bf16 through the DMA -> bf16 MXU operands (looser tol).
    loss5 = categorical_loss(anchor3.astype(jnp.bfloat16),
                             feature3.astype(jnp.bfloat16),
                             skewness=skewness, direction=direction3, weight=weight3)
    jax.block_until_ready(loss5)
    ref5 = _reference_loss(anchor3.astype(jnp.bfloat16).astype(jnp.float32),
                           feature3.astype(jnp.bfloat16).astype(jnp.float32),
                           skewness, direction3, weight3)
    assert abs(float(loss5) - float(ref5)) < 5e-2 * max(1.0, abs(float(ref5))), (
        float(loss5), float(ref5))

    print("KERNEL_OK")
</pallas_src>

<mosaic_0001>
module attributes {stable_mosaic.version = 11 : i64} {
  func.func @_categorical_loss_kernel(%arg0: i32, %arg1: memref<8x51xf32, #tpu.memory_space<vmem>>, %arg2: memref<8x51xf32, #tpu.memory_space<vmem>>, %arg3: memref<8x2xf32, #tpu.memory_space<vmem>>, %arg4: memref<51x51xf32, #tpu.memory_space<vmem>>, %arg5: memref<51x51xf32, #tpu.memory_space<vmem>>, %arg6: memref<1x1x51xf32, #tpu.memory_space<vmem>>) attributes {dimension_semantics = [#tpu.dimension_semantics<parallel>], iteration_bounds = array<i64: 1>, scalar_prefetch = 0 : i64, scratch_operands = 0 : i64, tpu.core_type = #tpu.core_type<tc>, window_params = [{transform_indices = @transform_0, window_bounds = array<i64: 8, 51>}, {transform_indices = @transform_1, window_bounds = array<i64: 8, 51>}, {transform_indices = @transform_2, window_bounds = array<i64: 8, 2>}, {pipeline_mode = #tpu.pipeline_mode<synchronous>, transform_indices = @transform_3, window_bounds = array<i64: 51, 51>}, {pipeline_mode = #tpu.pipeline_mode<synchronous>, transform_indices = @transform_4, window_bounds = array<i64: 51, 51>}, {transform_indices = @transform_5, window_bounds = array<i64: 1, 1, 51>}]} {
    %c0 = arith.constant 0 : index
    %c0_0 = arith.constant 0 : index
    %0 = vector.load %arg1[%c0, %c0_0] : memref<8x51xf32, #tpu.memory_space<vmem>>, vector<8x51xf32>
    %c0_1 = arith.constant 0 : index
    %c0_2 = arith.constant 0 : index
    %1 = vector.load %arg2[%c0_1, %c0_2] : memref<8x51xf32, #tpu.memory_space<vmem>>, vector<8x51xf32>
    %c8_i32 = arith.constant 8 : i32
    %2 = arith.muli %arg0, %c8_i32 : i32
    %3 = tpu.iota {dimensions = array<i32: 0>} : vector<8x1xi32>
    %4 = vector.broadcast %2 : i32 to vector<8x1xi32>
    %5 = arith.addi %4, %3 : vector<8x1xi32>
    %c2_i32 = arith.constant 2 : i32
    %6 = vector.broadcast %c2_i32 : i32 to vector<8x1xi32>
    %7 = arith.cmpi slt, %5, %6 : vector<8x1xi32>
    %cst = arith.constant 0.000000e+00 : f32
    %8 = vector.shape_cast %7 : vector<8x1xi1> to vector<8x1xi1>
    %9 = vector.broadcast %8 : vector<8x1xi1> to vector<8x51xi1>
    %10 = vector.broadcast %cst : f32 to vector<8x51xf32>
    %11 = arith.select %9, %0, %10 : vector<8x51xi1>, vector<8x51xf32>
    %cst_3 = arith.constant 1.000000e+00 : f32
    %12 = vector.shape_cast %7 : vector<8x1xi1> to vector<8x1xi1>
    %13 = vector.broadcast %12 : vector<8x1xi1> to vector<8x51xi1>
    %14 = vector.broadcast %cst_3 : f32 to vector<8x51xf32>
    %15 = arith.select %13, %1, %14 : vector<8x51xi1>, vector<8x51xf32>
    %cst_4 = arith.constant 1.000000e-16 : f32
    %16 = vector.broadcast %cst_4 : f32 to vector<8x51xf32>
    %17 = arith.addf %15, %16 : vector<8x51xf32>
    %18 = math.log %17 : vector<8x51xf32>
    %c0_5 = arith.constant 0 : index
    %c0_6 = arith.constant 0 : index
    %19 = vector.load %arg3[%c0_5, %c0_6] : memref<8x2xf32, #tpu.memory_space<vmem>>, vector<8x2xf32>
    %20 = vector.extract_strided_slice %19 {offsets = [0, 0], sizes = [8, 1], strides = [1, 1]} : vector<8x2xf32> to vector<8x1xf32>
    %21 = vector.extract_strided_slice %19 {offsets = [0, 1], sizes = [8, 1], strides = [1, 1]} : vector<8x2xf32> to vector<8x1xf32>
    %cst_7 = arith.constant 0.000000e+00 : f32
    %22 = vector.broadcast %cst_7 : f32 to vector<8x1xf32>
    %23 = arith.select %7, %20, %22 : vector<8x1xi1>, vector<8x1xf32>
    %cst_8 = arith.constant 0.000000e+00 : f32
    %24 = vector.broadcast %cst_8 : f32 to vector<8x1xf32>
    %25 = arith.select %7, %21, %24 : vector<8x1xi1>, vector<8x1xf32>
    %26 = vector.broadcast %23 : vector<8x1xf32> to vector<8x51xf32>
    %27 = arith.mulf %11, %26 : vector<8x51xf32>
    %c0_9 = arith.constant 0 : index
    %c0_10 = arith.constant 0 : index
    %28 = vector.load %arg4[%c0_9, %c0_10] : memref<51x51xf32, #tpu.memory_space<vmem>>, vector<51x51xf32>
    %cst_11 = arith.constant dense<0.000000e+00> : vector<8x51xf32>
    %29 = tpu.matmul %27, %28, %cst_11 {dimension_numbers = #tpu.dot_dimension_numbers<[1], [0], [0], [1], [0, 0, 1, 1], [], []>} : vector<8x51xf32>, vector<51x51xf32>, vector<8x51xf32> -> vector<8x51xf32>
    %30 = vector.broadcast %25 : vector<8x1xf32> to vector<8x51xf32>
    %31 = arith.mulf %11, %30 : vector<8x51xf32>
    %c0_12 = arith.constant 0 : index
    %c0_13 = arith.constant 0 : index
    %32 = vector.load %arg5[%c0_12, %c0_13] : memref<51x51xf32, #tpu.memory_space<vmem>>, vector<51x51xf32>
    %cst_14 = arith.constant dense<0.000000e+00> : vector<8x51xf32>
    %33 = tpu.matmul %31, %32, %cst_14 {dimension_numbers = #tpu.dot_dimension_numbers<[1], [0], [0], [1], [0, 0, 1, 1], [], []>} : vector<8x51xf32>, vector<51x51xf32>, vector<8x51xf32> -> vector<8x51xf32>
    %34 = arith.addf %29, %33 : vector<8x51xf32>
    %35 = arith.mulf %34, %18 : vector<8x51xf32>
    %cst_15 = arith.constant dense<0.000000e+00> : vector<51xf32>
    %36 = vector.multi_reduction <add>, %35, %cst_15 [0] : vector<8x51xf32> to vector<51xf32>
    %37 = vector.shape_cast %36 : vector<51xf32> to vector<1x51xf32>
    %38 = vector.shape_cast %37 : vector<1x51xf32> to vector<1x1x51xf32>
    %c0_16 = arith.constant 0 : index
    %c0_17 = arith.constant 0 : index
    %c0_18 = arith.constant 0 : index
    %39 = vector.load %arg6[%c0_16, %c0_17, %c0_18] : memref<1x1x51xf32, #tpu.memory_space<vmem>>, vector<1x1x51xf32>
    tpu.vector_store %arg6[%c0_16, %c0_17, %c0_18], %38 {strides = array<i32>} : memref<1x1x51xf32, #tpu.memory_space<vmem>>, vector<1x1x51xf32>,
    return
  }
  func.func @transform_0(%arg0: i32) -> (i32, i32) {
    %c0_i32 = arith.constant 0 : i32
    %c0_i32_0 = arith.constant 0 : i32
    return %arg0, %c0_i32 : i32, i32
  }
  func.func @transform_1(%arg0: i32) -> (i32, i32) {
    %c0_i32 = arith.constant 0 : i32
    %c0_i32_0 = arith.constant 0 : i32
    return %arg0, %c0_i32 : i32, i32
  }
  func.func @transform_2(%arg0: i32) -> (i32, i32) {
    %c0_i32 = arith.constant 0 : i32
    %c0_i32_0 = arith.constant 0 : i32
    return %arg0, %c0_i32 : i32, i32
  }
  func.func @transform_3(%arg0: i32) -> (i32, i32) {
    %c0_i32 = arith.constant 0 : i32
    %c0_i32_0 = arith.constant 0 : i32
    %c0_i32_1 = arith.constant 0 : i32
    return %c0_i32, %c0_i32_0 : i32, i32
  }
  func.func @transform_4(%arg0: i32) -> (i32, i32) {
    %c0_i32 = arith.constant 0 : i32
    %c0_i32_0 = arith.constant 0 : i32
    %c0_i32_1 = arith.constant 0 : i32
    return %c0_i32, %c0_i32_0 : i32, i32
  }
  func.func @transform_5(%arg0: i32) -> (i32, i32, i32) {
    %c0_i32 = arith.constant 0 : i32
    %c0_i32_0 = arith.constant 0 : i32
    %c0_i32_1 = arith.constant 0 : i32
    return %arg0, %c0_i32, %c0_i32_0 : i32, i32, i32
  }
}

</mosaic_0001>

<bundles_post_ra>
// kernel: tpu_custom_call.1
= control target key start
LH: loop header
LB: loop body
LE: loop exit
PB: predicated region body
PF: predicated region fallthrough
CT: control target
= control target key end

     0   :  { %10 = vsyncpa [#allocation3], 0  ;;  %s462_s0 = inlined_call_operand.hbm [shape: f32[2,51], index: 0, kind: input, shape index: {}]   ;;  %s463_s1 = inlined_call_operand.hbm [shape: f32[2,51], index: 1, kind: input, shape index: {}]   ;;  %s464_s2 = inlined_call_operand.hbm [shape: f32[2,2], index: 2, kind: input, shape index: {}]   ;;  %s465_s3 = inlined_call_operand.hbm [shape: f32[51,51], index: 3, kind: input, shape index: {}]   ;;  %s466_s4 = inlined_call_operand.hbm [shape: f32[51,51], index: 4, kind: input, shape index: {}]   ;;  %s467_s5 = inlined_call_operand.hbm [shape: f32[1,1,51], index: 5, kind: output, shape index: {}]  }
   0x1   :  { %11 = vsyncpa [#allocation6], 0 }
   0x2   :  { %12 = vsyncpa [#allocation9], 0 }
   0x3   :  { %13 = vsyncpa [#allocation4], 0 }
   0x4   :  { %17 = vsyncadd [#allocation3], 96  ;;  %s18_s20 = sshll.u32 %s462_s0, 4  ;;  %s396_s21 = smov [#allocation2]   ;;  %s19_s20 = int_to_ptr.hbm [resolvable:$true] %s18_s20 }
   0x5   :  { %s20_s22 = sshll.u32 %s396_s21, 4  ;;  %s397_s23 = smov 32   ;;  %s21_s22 = int_to_ptr.vmem [resolvable:$true] %s20_s22 }
   0x6   :  { %s398_s24 = smov 2  }
   0x7   :  { %26 = dma.hbm_to_vmem [thread:$0]  %s19_s20, 32, %s21_s22, [#allocation3], %s397_s23, %s397_s23, %s398_s24  }
   0x8   :  { %30 = vsyncadd [#allocation6], 96  ;;  %s31_s27 = sshll.u32 %s463_s1, 4  ;;  %s399_s28 = smov [#allocation5]   ;;  %s32_s27 = int_to_ptr.hbm [resolvable:$true] %s31_s27 }
   0x9   :  { %s33_s29 = sshll.u32 %s399_s28, 4  ;;  %s57_s0 = sshll.u32 %s465_s3, 4  ;;  %s34_s29 = int_to_ptr.vmem [resolvable:$true] %s33_s29  ;;  %s58_s0 = int_to_ptr.hbm [resolvable:$true] %s57_s0 }
   0xa   :  { %39 = dma.hbm_to_vmem [thread:$0]  %s32_s27, 32, %s34_s29, [#allocation6], %s397_s23, %s397_s23, %s398_s24  }
   0xb   :  { %43 = vsyncadd [#allocation6], 96  ;;  %s400_s7 = smov [#allocation8]   ;;  %s44_s11 = sshll.u32 %s464_s2, 4  ;;  %s45_s11 = int_to_ptr.hbm [resolvable:$true] %s44_s11 }
   0xc   :  { %s59_s8 = sshll.u32 %s400_s7, 4  ;;  %s401_s12 = smov 128   ;;  %s60_s8 = int_to_ptr.vmem [resolvable:$true] %s59_s8 }
   0xd   :  { %s402_s1 = smov 8   ;;  %s403_s13 = smov [#allocation7]  }
   0xe   :  { %65 = dma.hbm_to_vmem [thread:$0]  %s58_s0, 896, %s60_s8, [#allocation9], %s401_s12, %s401_s12, %s402_s1  }
   0xf   :  { %s46_s14 = sshll.u32 %s403_s13, 4  ;;  %s70_s17 = sshll.u32 %s466_s4, 4  ;;  %s47_s14 = int_to_ptr.vmem [resolvable:$true] %s46_s14  ;;  %s71_s17 = int_to_ptr.hbm [resolvable:$true] %s70_s17 }
  0x10   :  { %52 = dma.hbm_to_vmem [thread:$0]  %s45_s11, 32, %s47_s14, [#allocation6], %s397_s23, %s397_s23, %s398_s24  }
  0x11   :  { %s404_s3 = smov [#allocation10]  }
  0x12   :  { %s72_s18 = sshll.u32 %s404_s3, 4  ;;  %s73_s18 = int_to_ptr.vmem [resolvable:$true] %s72_s18 }
  0x13   :  { %78 = dma.hbm_to_vmem [thread:$0]  %s71_s17, 896, %s73_s18, [#allocation9], %s401_s12, %s401_s12, %s402_s1  }
  0x14   :  { %388 = dma.done.wait [#allocation3], 128  }
  0x15   :  { %389 = vsyncadd [#allocation3], 4294967168 }
  0x16   :  { %390 = dma.done.wait [#allocation6], 256  }
  0x17   :  { %391 = vsyncadd [#allocation6], 4294967040 }
  0x18   :  { %392 = dma.done.wait [#allocation9], 1792  }
  0x19   :  { %393 = vsyncadd [#allocation9], 4294965504  ;;  %v102_v0 = vlaneseq  ;;  %v405_v1 = vmov 0   ;;  %vm145_vm1 = vcmask 1042432   ;;  %v114_v3 = vld [vmem:[#allocation7] sm:$0xff]  ;;  %v127_v6 = vld [vmem:[#allocation8 + $0x28] sm:$0xff] }
  0x1a   :  { %240 = vset.pattern.permute.xlu0 %v405_v1  ;;  %v128_v4 = vld [vmem:[#allocation8 + $0x30] sm:$0x7]  ;;  %v126_v7 = vld [vmem:[#allocation8 + $0x20] sm:$0xff]  ;;  %v140_v8 = vld [vmem:[#allocation10 + $0x30] sm:$0x7]  ;;  %v406_v12 = vmov 1  }
  0x1b   :  { %v103_v2 = vshrl.u32 %v102_v0, 7  ;;  %226 = vmatpush.msk.msra.mxu1 %vm145_vm1, %v128_v4  ;;  %224 = vmatpush.msk.msra.mxu0 %vm145_vm1, %v140_v8  ;;  %v125_v9 = vld [vmem:[#allocation8 + $0x18] sm:$0xff]  ;;  %v124_v10 = vld [vmem:[#allocation8 + $0x10] sm:$0xff]  ;;  %v123_v11 = vld [vmem:[#allocation8 + $0x8] sm:$0xff]  ;;  %vm141_vm2 = vcmask 416768   ;;  %s407_s2 = smov [#allocation11]  }
  0x1c   :  { %v139_v13 = vld [vmem:[#allocation10 + $0x28] sm:$0xff]  ;;  %v138_v15 = vld [vmem:[#allocation10 + $0x20] sm:$0xff]  ;;  %v137_v16 = vld [vmem:[#allocation10 + $0x18] sm:$0xff]  ;;  %s210_s4 = sshll.u32 %s407_s2, 4  ;;  %s212_s21 = sshll.u32 %s467_s5, 4  ;;  %vm203_vm3 = vcmask 409600   ;;  %s211_s4 = int_to_ptr.vmem [resolvable:$true] %s210_s4  ;;  %s213_s21 = int_to_ptr.hbm [resolvable:$true] %s212_s21 }
  0x1d   :  { %vm106_vm0 = vcmp.lt.s32.totalorder %v103_v2, 2  ;;  %185 = vmatpush.msra.mxu1 %v127_v6  ;;  %159 = vmatpush.msra.mxu0 %v139_v13  ;;  %v122_v14 = vld [vmem:[#allocation8] sm:$0xff]  ;;  %v136_v17 = vld [vmem:[#allocation10 + $0x10] sm:$0xff]  ;;  %v134_v19 = vld [vmem:[#allocation10] sm:$0xff] }
  0x1e   :  { %v115_v5 = vsel %vm106_vm0, %v114_v3, 0.0  ;;  %v135_v18 = vld [vmem:[#allocation10 + $0x8] sm:$0xff]  ;;  %v99_v20 = vld [vmem:[#allocation2] sm:$0xff]  ;;  %v100_v26 = vld [vmem:[#allocation5] sm:$0xff] }
  0x1f   :  { %118 = vperm.xlu0 %240, %v115_v5   ;;  %186 = vmatpush.msra.mxu1 %v126_v7  ;;  %v109_v21 = vsel %vm106_vm0, %v99_v20, 0.0  ;;  %v110_v27 = vsel %vm106_vm0, %v100_v26, 1.0 }
  0x20   :  { %160 = vmatpush.msra.mxu0 %v138_v15  ;;  %v111_v28 = vadd.f32 1e-16, %v110_v27 }
  0x21   :  { %187 = vmatpush.msra.mxu1 %v125_v9 }
  0x22   :  { %161 = vmatpush.msra.mxu0 %v137_v16  ;;  %242 = vlog2.f32 %v111_v28 }
  0x23   :  { %188 = vmatpush.msra.mxu1 %v124_v10 }
  0x24   :  { %162 = vmatpush.msra.mxu0 %v136_v17 }
  0x25   :  { %189 = vmatpush.msra.mxu1 %v123_v11 }
  0x26   :  { %163 = vmatpush.msra.mxu0 %v135_v18 }
  0x27   :  { %241 = vset.pattern.permute.xlu0 %v406_v12  ;;  %190 = vmatpush.msra.mxu1 %v122_v14 }
  0x28   :  { %130 = vperm.xlu0 %241, %v115_v5   ;;  %164 = vmatpush.msra.mxu0 %v134_v19  ;;  %v243_v29 = vpop.eup %242 }
  0x29   :  { %v113_v30 = vmul.f32 0.6931472, %v243_v29 }
  0x91   :  { %v119_v22 = vpop.permute.xlu0 %118 }
  0x92   :  { %v121_v23 = vmul.f32 %v119_v22, %v109_v21 }
  0x94   :  { %227 = vmatmul.msk.f32.vlgmr.msra.gmra.mxu1 %vm141_vm2, %v121_v23 }
  0x9a   :  { %v131_v24 = vpop.permute.xlu0 %130 }
  0x9b   :  { %v133_v25 = vmul.f32 %v131_v24, %v109_v21 }
  0x9d   :  { %225 = vmatmul.msk.f32.vlgmr.msra.gmra.mxu0 %vm141_vm2, %v133_v25 }
 0x111   :  { %v192_v31 = vpop.f32.mrf.mxu1 }
 0x11a   :  { %v166_v32 = vpop.f32.mrf.mxu0 }
 0x11b   :  { %v193_v33 = vadd.f32 %v192_v31, %v166_v32 }
 0x11d   :  { %v195_v34 = vmul.f32 %v193_v33, %v113_v30 }
 0x11f   :  { %v196_v35 = vsel %vm141_vm2, %v195_v34, 0.0 }
 0x120   :  { %v197_v36 = vrot.slane %v196_v35, 4 }
 0x122   :  { %v198_v37 = vadd.f32 %v197_v36, %v196_v35 }
 0x124   :  { %v199_v38 = vrot.slane %v198_v37, 2 }
 0x126   :  { %v200_v39 = vadd.f32 %v199_v38, %v198_v37 }
 0x128   :  { %v201_v40 = vrot.slane %v200_v39, 1 }
 0x12a   :  { %v202_v41 = vadd.f32 %v201_v40, %v200_v39 }
 0x12c   :  { %204 = vst.msk [vmem:[#allocation11] sm:$0x1] %vm203_vm3, %v202_v41 }
 0x12d   :  { %215 = dma.vmem_to_hbm [thread:$0]  %s211_s4, 16, %s213_s21, [#allocation4]  }
 0x12e   :  { %394 = dma.done.wait [#allocation4], 16  }
 0x12f   :  { %395 = vsyncadd [#allocation4], 4294967280 }
 0x130   :  { %220 = vsyncpa [#allocation3], 1 }
 0x131   :  { %221 = vsyncpa [#allocation6], 1 }
 0x132   :  { %222 = vsyncpa [#allocation9], 1 }
 0x133   :  { %223 = vsyncpa [#allocation4], 1 }

</bundles_post_ra>
